<compile_context>
chip_gen: v6e
topology: v6e:2x2x1
jax: 0.10.0
libtpu: 0.0.40
codegen_flags: <defaults>
</compile_context>

<pallas_src>
import functools

import jax
import jax.numpy as jnp
from jax import lax
from jax.experimental import pallas as pl
from jax.experimental.pallas import tpu as pltpu


def _cdiv(a, b):
    return (a + b - 1) // b


def _round_up(a, b):
    return _cdiv(a, b) * b


def _vmem_capacity_bytes():
    """Physical VMEM of the attached TPU (128 MiB v5e/v6e, 64 MiB v7x)."""
    try:
        return int(pltpu.get_tpu_info().vmem_capacity_bytes)
    except Exception:
        return 64 << 20          # conservative fallback, valid on every generation


def _vmem_estimate(rows, K, D, itemsize):
    """Per-grid-step VMEM footprint (bytes) of the kernel below."""
    return (2 * rows * K * itemsize      # activation tile, double-buffered
            + K * D * itemsize           # weight, single-buffered (Buffered(1))
            + 8 * D * 4                  # packed bias/gamma/beta, single-buffered
            + 2 * D * rows * itemsize    # output tile, double-buffered
            + 3 * rows * D * 4)          # live f32 LN/GELU/transpose temporaries


def _choose_row_block(HW, B, K, D, itemsize, budget_bytes):
    """Row (patch) tile for HW >= 128: largest power-of-two multiple of 128
    (<= 1024) that fits the VMEM budget while keeping >= 4 total grid steps
    so both v7x TensorCores get a pipelined stream of tiles."""
    rows = 128
    limit = min(1024, _round_up(HW, 128))
    while (rows * 2 <= limit
           and _vmem_estimate(rows * 2, K, D, itemsize) <= budget_bytes
           and B * _cdiv(HW, rows * 2) >= 4):
        rows *= 2
    return rows


def _patch_embed_kernel(x_ref, w_ref, v_ref, o_ref, *, eps, approximate_gelu):
    # x_ref: [rows, K] (activation dtype)   w_ref: [K, D] (activation dtype)
    # v_ref: [8, D] f32 -- row 0 conv bias, row 1 ln gamma, row 2 ln beta
    # o_ref: [D, rows] (activation dtype)   -- transposed (NCHW-friendly) tile

    # Conv (as matmul over the flattened patch) on the MXU, f32 accumulation.
    y = jnp.dot(x_ref[...], w_ref[...], preferred_element_type=jnp.float32)
    y = y + v_ref[0:1, :]

    # LayerNorm over embed_dim (biased variance, like torch.nn.LayerNorm), f32.
    mean = jnp.mean(y, axis=-1, keepdims=True)
    centered = y - mean
    var = jnp.mean(centered * centered, axis=-1, keepdims=True)
    y = centered * (lax.rsqrt(var + jnp.float32(eps)) * v_ref[1:2, :]) + v_ref[2:3, :]

    if approximate_gelu:
        # tanh GELU on the EUP slot (frees the VALU on v5e / v7x-roofline
        # configs); NOT bit-identical to PyTorch's default exact-erf GELU.
        c = jnp.float32(0.7978845608028654)        # sqrt(2/pi)
        y = 0.5 * y * (1.0 + jnp.tanh(c * (y + 0.044715 * (y * y * y))))
    else:
        # Exact GELU: 0.5 * x * (1 + erf(x / sqrt(2)))  (PyTorch default).
        y = 0.5 * y * (1.0 + lax.erf(y * jnp.float32(0.7071067811865476)))

    # Transpose in VMEM so the store is already channel-major; this removes the
    # wrapper-side [N, D] -> [D, N] HBM pass the old version paid for NCHW.
    o_ref[...] = y.T.astype(o_ref.dtype)


def pack_patch_embed_params(conv_w, conv_b, ln_g, ln_b, *,
                            activation_dtype=jnp.float32):
    """One-time (init-time) parameter prep, hoisted out of the forward pass:
    conv weight [D, C, p, p] -> matmul weight [K, D] in the (c, ki, kj)
    flatten order, cast once to the activation dtype; conv bias / ln gamma /
    ln beta packed into a single [8, D] f32 operand (rows 0..2 used)."""
    D = conv_w.shape[0]
    K = conv_w.shape[1] * conv_w.shape[2] * conv_w.shape[3]
    w2d = jnp.asarray(conv_w).reshape(D, K).T.astype(activation_dtype)
    vecs = jnp.zeros((8, D), jnp.float32)
    vecs = vecs.at[0].set(conv_b.astype(jnp.float32))
    vecs = vecs.at[1].set(ln_g.astype(jnp.float32))
    vecs = vecs.at[2].set(ln_b.astype(jnp.float32))
    return w2d, vecs


def patch_embed(x, w2d, vecs, *, patch_size, eps=1e-5, row_block=None,
                approximate_gelu=False):
    """x: [B, C, H, W] (NCHW, like torch).  Returns NCHW [B, D, Hp, Wp]."""
    B, C, H, W = x.shape
    K, D = w2d.shape
    p = patch_size
    assert H % p == 0 and W % p == 0, "image size must be divisible by patch"
    assert K == C * p * p, "packed weight does not match in_chans / patch_size"
    Hp, Wp = H // p, W // p
    HW = Hp * Wp
    itemsize = jnp.dtype(x.dtype).itemsize

    cap = _vmem_capacity_bytes()
    if row_block is not None:
        rows = int(row_block)                    # caller override (used for both
        HW_pad = rows if HW < rows else HW       # the grid and the VMEM estimate)
    elif HW <= 128:
        # Tiny image: one full-extent tile per image, rounded up to the sublane
        # granule so the in-kernel transpose / stores stay tile-aligned.
        rows = _round_up(HW, 8)
        HW_pad = rows
    else:
        rows = _choose_row_block(HW, B, K, D, itemsize,
                                 budget_bytes=int(cap * 0.65))
        HW_pad = HW                              # tail handled as a partial block
    est = _vmem_estimate(rows, K, D, itemsize)
    vmem_limit = int(min(max(est + (8 << 20), 32 << 20), int(cap * 0.8)))

    # Non-overlapping patch flatten (pure reshape/transpose, no compute);
    # feature order is (c, ki, kj), matching pack_patch_embed_params.
    # TODO(synk): verify in the HLO that this fuses into the kernel input DMA
    # (allow_input_fusion is a hint); otherwise it costs one HBM pass on x.
    xp = x.reshape(B, C, Hp, p, Wp, p).transpose(0, 2, 4, 1, 3, 5).reshape(B, HW, K)
    if HW_pad != HW:
        xp = jnp.pad(xp, ((0, 0), (0, HW_pad - HW), (0, 0)))

    grid = (B, _cdiv(HW_pad, rows))

    out = pl.pallas_call(
        functools.partial(_patch_embed_kernel, eps=eps,
                          approximate_gelu=approximate_gelu),
        out_shape=jax.ShapeDtypeStruct((B, D, HW_pad), x.dtype),
        grid_spec=pltpu.PrefetchScalarGridSpec(
            num_scalar_prefetch=0,
            grid=grid,
            in_specs=[
                # activation tile [rows, K] (batch dim squeezed away)
                pl.BlockSpec((pl.Squeezed(), rows, K), lambda b, j: (b, j, 0)),
                # grid-invariant operands: DMA'd once, keep a single buffer.
                pl.BlockSpec((K, D), lambda b, j: (0, 0),
                             pipeline_mode=pl.Buffered(1)),
                pl.BlockSpec((8, D), lambda b, j: (0, 0),
                             pipeline_mode=pl.Buffered(1)),
            ],
            out_specs=pl.BlockSpec((pl.Squeezed(), D, rows),
                                   lambda b, j: (b, 0, j)),
        ),
        compiler_params=pltpu.CompilerParams(
            dimension_semantics=("parallel", "parallel"),
            vmem_limit_bytes=vmem_limit,
            allow_input_fusion=[True, False, False],
        ),
    )(xp, w2d, vecs)

    if HW_pad != HW:
        out = out[:, :, :HW]
    return out.reshape(B, D, Hp, Wp)


def _reference(x, conv_w, conv_b, ln_g, ln_b, *, patch_size, eps=1e-5):
    y = lax.conv_general_dilated(
        x, conv_w, window_strides=(patch_size, patch_size), padding="VALID",
        dimension_numbers=("NCHW", "OIHW", "NCHW"))
    y = y + conv_b[None, :, None, None]
    y = jnp.transpose(y, (0, 2, 3, 1))
    mean = jnp.mean(y, axis=-1, keepdims=True)
    var = jnp.mean((y - mean) ** 2, axis=-1, keepdims=True)
    y = (y - mean) * lax.rsqrt(var + eps) * ln_g + ln_b
    y = jnp.transpose(y, (0, 3, 1, 2))
    return 0.5 * y * (1.0 + lax.erf(y / jnp.sqrt(2.0)))


if __name__ == "__main__":
    # Small shapes consistent with the module: B=2, in_chans=4, H=W=16,
    # patch_size=8 -> 2x2 grid of patches, embed_dim=32.
    B, C, H, W = 2, 4, 16, 16
    patch_size, embed_dim = 8, 32

    key = jax.random.PRNGKey(0)
    k_x, k_w, k_b, k_g, k_beta = jax.random.split(key, 5)

    x = jax.random.normal(k_x, (B, C, H, W), dtype=jnp.float32)
    conv_w = jax.random.normal(
        k_w, (embed_dim, C, patch_size, patch_size), dtype=jnp.float32) * 0.02
    conv_b = jax.random.normal(k_b, (embed_dim,), dtype=jnp.float32) * 0.02
    ln_g = 1.0 + 0.1 * jax.random.normal(k_g, (embed_dim,), dtype=jnp.float32)
    ln_b = 0.1 * jax.random.normal(k_beta, (embed_dim,), dtype=jnp.float32)

    # One-time parameter packing (module-init time in a real model).
    w2d, vecs = pack_patch_embed_params(conv_w, conv_b, ln_g, ln_b,
                                        activation_dtype=x.dtype)

    fwd = jax.jit(functools.partial(patch_embed, patch_size=patch_size))
    out = jax.block_until_ready(fwd(x, w2d, vecs))

    ref = _reference(x, conv_w, conv_b, ln_g, ln_b, patch_size=patch_size)
    assert out.shape == (B, embed_dim, H // patch_size, W // patch_size)
    assert jnp.allclose(out, ref, atol=2e-5, rtol=2e-5), \
        float(jnp.max(jnp.abs(out - ref)))

    print("KERNEL_OK")
</pallas_src>

<mosaic_0001>
module attributes {stable_mosaic.version = 11 : i64} {
  func.func @_patch_embed_kernel(%arg0: i32, %arg1: i32, %arg2: memref<1x8x256xf32, #tpu.memory_space<vmem>>, %arg3: memref<256x32xf32, #tpu.memory_space<vmem>>, %arg4: memref<8x32xf32, #tpu.memory_space<vmem>>, %arg5: memref<1x32x8xf32, #tpu.memory_space<vmem>>) attributes {dimension_semantics = [#tpu.dimension_semantics<parallel>, #tpu.dimension_semantics<parallel>], iteration_bounds = array<i64: 2, 1>, scalar_prefetch = 0 : i64, scratch_operands = 0 : i64, tpu.core_type = #tpu.core_type<tc>, window_params = [{transform_indices = @transform_0, window_bounds = array<i64: 1, 8, 256>}, {pipeline_mode = #tpu.pipeline_mode<synchronous>, transform_indices = @transform_1, window_bounds = array<i64: 256, 32>}, {pipeline_mode = #tpu.pipeline_mode<synchronous>, transform_indices = @transform_2, window_bounds = array<i64: 8, 32>}, {transform_indices = @transform_3, window_bounds = array<i64: 1, 32, 8>}]} {
    %c0 = arith.constant 0 : index
    %c0_0 = arith.constant 0 : index
    %c0_1 = arith.constant 0 : index
    %0 = vector.load %arg2[%c0, %c0_0, %c0_1] : memref<1x8x256xf32, #tpu.memory_space<vmem>>, vector<1x8x256xf32>
    %1 = vector.shape_cast %0 : vector<1x8x256xf32> to vector<8x256xf32>
    %c0_2 = arith.constant 0 : index
    %c0_3 = arith.constant 0 : index
    %2 = vector.load %arg3[%c0_2, %c0_3] : memref<256x32xf32, #tpu.memory_space<vmem>>, vector<256x32xf32>
    %cst = arith.constant dense<0.000000e+00> : vector<8x32xf32>
    %3 = tpu.matmul %1, %2, %cst {dimension_numbers = #tpu.dot_dimension_numbers<[1], [0], [0], [1], [0, 0, 1, 1], [], []>} : vector<8x256xf32>, vector<256x32xf32>, vector<8x32xf32> -> vector<8x32xf32>
    %c0_4 = arith.constant 0 : index
    %c0_5 = arith.constant 0 : index
    %4 = vector.load %arg4[%c0_4, %c0_5] : memref<8x32xf32, #tpu.memory_space<vmem>>, vector<1x32xf32>
    %5 = vector.broadcast %4 : vector<1x32xf32> to vector<8x32xf32>
    %6 = arith.addf %3, %5 : vector<8x32xf32>
    %cst_6 = arith.constant dense<0.000000e+00> : vector<8xf32>
    %7 = vector.multi_reduction <add>, %6, %cst_6 [1] : vector<8x32xf32> to vector<8xf32>
    %8 = vector.shape_cast %7 : vector<8xf32> to vector<8x1xf32>
    %cst_7 = arith.constant 3.200000e+01 : f32
    %9 = vector.broadcast %cst_7 : f32 to vector<8x1xf32>
    %10 = arith.divf %8, %9 : vector<8x1xf32>
    %11 = vector.broadcast %10 : vector<8x1xf32> to vector<8x32xf32>
    %12 = arith.subf %6, %11 : vector<8x32xf32>
    %13 = arith.mulf %12, %12 : vector<8x32xf32>
    %cst_8 = arith.constant dense<0.000000e+00> : vector<8xf32>
    %14 = vector.multi_reduction <add>, %13, %cst_8 [1] : vector<8x32xf32> to vector<8xf32>
    %15 = vector.shape_cast %14 : vector<8xf32> to vector<8x1xf32>
    %cst_9 = arith.constant 3.200000e+01 : f32
    %16 = vector.broadcast %cst_9 : f32 to vector<8x1xf32>
    %17 = arith.divf %15, %16 : vector<8x1xf32>
    %cst_10 = arith.constant 9.99999974E-6 : f32
    %18 = vector.broadcast %cst_10 : f32 to vector<8x1xf32>
    %19 = arith.addf %17, %18 : vector<8x1xf32>
    %20 = math.rsqrt %19 : vector<8x1xf32>
    %c1 = arith.constant 1 : index
    %c0_11 = arith.constant 0 : index
    %21 = vector.load %arg4[%c1, %c0_11] : memref<8x32xf32, #tpu.memory_space<vmem>>, vector<1x32xf32>
    %22 = vector.broadcast %20 : vector<8x1xf32> to vector<8x32xf32>
    %23 = vector.broadcast %21 : vector<1x32xf32> to vector<8x32xf32>
    %24 = arith.mulf %22, %23 : vector<8x32xf32>
    %25 = arith.mulf %12, %24 : vector<8x32xf32>
    %c2 = arith.constant 2 : index
    %c0_12 = arith.constant 0 : index
    %26 = vector.load %arg4[%c2, %c0_12] : memref<8x32xf32, #tpu.memory_space<vmem>>, vector<1x32xf32>
    %27 = vector.broadcast %26 : vector<1x32xf32> to vector<8x32xf32>
    %28 = arith.addf %25, %27 : vector<8x32xf32>
    %cst_13 = arith.constant 5.000000e-01 : f32
    %29 = vector.broadcast %cst_13 : f32 to vector<8x32xf32>
    %30 = arith.mulf %29, %28 : vector<8x32xf32>
    %cst_14 = arith.constant 0.707106769 : f32
    %31 = vector.broadcast %cst_14 : f32 to vector<8x32xf32>
    %32 = arith.mulf %28, %31 : vector<8x32xf32>
    %33 = math.erf %32 : vector<8x32xf32>
    %cst_15 = arith.constant 1.000000e+00 : f32
    %34 = vector.broadcast %cst_15 : f32 to vector<8x32xf32>
    %35 = arith.addf %34, %33 : vector<8x32xf32>
    %36 = arith.mulf %30, %35 : vector<8x32xf32>
    %37 = tpu.transpose %36, [1, 0] : vector<8x32xf32> -> vector<32x8xf32>
    %c0_16 = arith.constant 0 : index
    %c0_17 = arith.constant 0 : index
    %c0_18 = arith.constant 0 : index
    %38 = vector.load %arg5[%c0_16, %c0_17, %c0_18] : memref<1x32x8xf32, #tpu.memory_space<vmem>>, vector<1x32x8xf32>
    %39 = vector.shape_cast %38 : vector<1x32x8xf32> to vector<32x8xf32>
    %40 = vector.shape_cast %37 : vector<32x8xf32> to vector<1x32x8xf32>
    tpu.vector_store %arg5[%c0_16, %c0_17, %c0_18], %40 {strides = array<i32>} : memref<1x32x8xf32, #tpu.memory_space<vmem>>, vector<1x32x8xf32>,
    return
  }
  func.func @transform_0(%arg0: i32, %arg1: i32) -> (i32, i32, i32) {
    %c0_i32 = arith.constant 0 : i32
    %c0_i32_0 = arith.constant 0 : i32
    return %arg0, %arg1, %c0_i32 : i32, i32, i32
  }
  func.func @transform_1(%arg0: i32, %arg1: i32) -> (i32, i32) {
    %c0_i32 = arith.constant 0 : i32
    %c0_i32_0 = arith.constant 0 : i32
    %c0_i32_1 = arith.constant 0 : i32
    return %c0_i32, %c0_i32_0 : i32, i32
  }
  func.func @transform_2(%arg0: i32, %arg1: i32) -> (i32, i32) {
    %c0_i32 = arith.constant 0 : i32
    %c0_i32_0 = arith.constant 0 : i32
    %c0_i32_1 = arith.constant 0 : i32
    return %c0_i32, %c0_i32_0 : i32, i32
  }
  func.func @transform_3(%arg0: i32, %arg1: i32) -> (i32, i32, i32) {
    %c0_i32 = arith.constant 0 : i32
    %c0_i32_0 = arith.constant 0 : i32
    return %arg0, %c0_i32, %arg1 : i32, i32, i32
  }
}

</mosaic_0001>

<bundles_post_ra>
// kernel: patch_embed.2
= control target key start
LH: loop header
LB: loop body
LE: loop exit
PB: predicated region body
PF: predicated region fallthrough
CT: control target
= control target key end

     0   :  { %s661_s17 = smov 0   ;;  %s663_s18 = smov 0   ;;  %s817_s0 = inlined_call_operand.vmem [shape: f32[256,32], index: 0, kind: input, shape index: {}]   ;;  %s818_s1 = inlined_call_operand.vmem [shape: f32[8,32], index: 1, kind: input, shape index: {}]   ;;  %s819_s2 = inlined_call_operand.vmem [shape: f32[2,4,256], index: 2, kind: input, shape index: {}]   ;;  %s820_s3 = inlined_call_operand.<no memory space> [shape: f32[], index: 3, kind: input, shape index: {}]   ;;  %s821_s4 = inlined_call_operand.vmem [shape: f32[2,32,8], index: 4, kind: output, shape index: {}]  }
   0x1   :  { %v9_v0 = vstv %s820_s3  ;;  %s665_s19 = smov 0  }
   0x2 LB: > { %s27_s20 = sadd.s32 1, %s627_s18  ;;  %p532_p0 = scmp.ge.s32.totalorder %s631_s19, 1  ;;  %s631_s19 = sphi %s665_s19, %s15_s19   ;;  %s627_s18 = sphi %s663_s18, %s823_s18   ;;  %s623_s17 = sphi %s661_s17, %s822_s17  }
   0x3   : > { %p29_p1 = scmp.ge.s32.totalorder %s27_s20, 2  ;;  %p165_p2 = scmp.lt.s32.totalorder %s631_s19, 3 }
   0x5   : > { %s825_s20 = smov (%p29_p1, %s27_s20), 0  ;;  %p166_p3 = pnand %p532_p0, %p165_p2 }
   0x6   : > { %p202_p4 = scmp.lt.s32.totalorder (!%p166_p3), %s623_s17, 1 }
   0x7   : > { %169 = sbr.rel (%p166_p3) target bundleno = 710 (0x2c6), region = 32 }
   0xc   : > { %v297_v1 = vld [vmem:[%s817_s0 + $0xf8] sm:$0xff]  ;;  %v296_v3 = vld [vmem:[%s817_s0 + $0xf0] sm:$0xff]  ;;  %v233_v4 = vlaneseq  ;;  %v295_v6 = vld [vmem:[%s817_s0 + $0xe8] sm:$0xff]  ;;  %s827_s17 = smov (!%p202_p4, %s623_s17), 1  ;;  %vm373_vm1 = vcmask 261120   ;;  %vm437_vm2 = vcmask 64512  }
   0xd   : > { %v281_v2 = vld [vmem:[%s817_s0 + $0x78] sm:$0xff]  ;;  %545 = vmatprep.subr.mxu0 %v297_v1  ;;  %v280_v5 = vld [vmem:[%s817_s0 + $0x70] sm:$0xff]  ;;  %v279_v7 = vld [vmem:[%s817_s0 + $0x68] sm:$0xff]  ;;  %s543_s9 = sshll.u32 %s827_s17, 3  ;;  %s544_s8 = sshll.u32 %s827_s17, 5 }
   0xe   : > { %546 = vmatpush3.msra.mxu0 %v281_v2  ;;  %v294_v8 = vld [vmem:[%s817_s0 + $0xe0] sm:$0xff]  ;;  %v234_v9 = vshrl.u32 %v233_v4, 7  ;;  %v293_v11 = vld [vmem:[%s817_s0 + $0xd8] sm:$0xff]  ;;  %s715_s22 = scalar_lea.vmem %s819_s2, %s543_s9  ;;  %v292_v13 = vld [vmem:[%s817_s0 + $0xd0] sm:$0xff]  ;;  %s221_s11 = scalar_lea.vmem %s821_s4, %s544_s8 }
   0xf   : > { %547 = vmatprep.subr.mxu0 %v296_v3  ;;  %v278_v10 = vld [vmem:[%s817_s0 + $0x60] sm:$0xff]  ;;  %v277_v12 = vld [vmem:[%s817_s0 + $0x58] sm:$0xff]  ;;  %v276_v14 = vld [vmem:[%s817_s0 + $0x50] sm:$0xff] }
  0x10   : > { %548 = vmatpush3.msra.mxu0 %v280_v5  ;;  %vm237_vm0 = vcmp.lt.s32.totalorder %v234_v9, 4  ;;  %v291_v15 = vld [vmem:[%s817_s0 + $0xc8] sm:$0xff]  ;;  %v537_v16 = vld [vmem:[%s715_s22 + $0x4] sm:$0xf]  ;;  %v289_v21 = vld [vmem:[%s817_s0 + $0xb8] sm:$0xff] }
  0x11   : > { %549 = vmatprep.subr.mxu0 %v295_v6  ;;  %v275_v17 = vld [vmem:[%s817_s0 + $0x48] sm:$0xff]  ;;  %v259_v18 = vsel %vm237_vm0, %v537_v16, %v9_v0  ;;  %v290_v19 = vld [vmem:[%s817_s0 + $0xc0] sm:$0xff]  ;;  %v273_v22 = vld [vmem:[%s817_s0 + $0x38] sm:$0xff] }
  0x12   : > { %550 = vmatpush3.msra.mxu0 %v279_v7  ;;  %367 = vmatprep.mubr.f32.mxu0 %v259_v18  ;;  %v274_v20 = vld [vmem:[%s817_s0 + $0x40] sm:$0xff]  ;;  %v288_v23 = vld [vmem:[%s817_s0 + $0xb0] sm:$0xff]  ;;  %v287_v25 = vld [vmem:[%s817_s0 + $0xa8] sm:$0xff] }
  0x13   : > { %551 = vmatprep.subr.mxu0 %v294_v8  ;;  %v272_v24 = vld [vmem:[%s817_s0 + $0x30] sm:$0xff]  ;;  %v271_v26 = vld [vmem:[%s817_s0 + $0x28] sm:$0xff]  ;;  %v286_v27 = vld [vmem:[%s817_s0 + $0xa0] sm:$0xff] }
  0x14   : > { %552 = vmatpush3.msra.mxu0 %v278_v10  ;;  %v270_v28 = vld [vmem:[%s817_s0 + $0x20] sm:$0xff]  ;;  %v285_v29 = vld [vmem:[%s817_s0 + $0x98] sm:$0xff]  ;;  %v284_v31 = vld [vmem:[%s817_s0 + $0x90] sm:$0xff] }
  0x15   : > { %553 = vmatprep.subr.mxu0 %v293_v11  ;;  %v269_v30 = vld [vmem:[%s817_s0 + $0x18] sm:$0xff]  ;;  %v268_v32 = vld [vmem:[%s817_s0 + $0x10] sm:$0xff]  ;;  %v283_v33 = vld [vmem:[%s817_s0 + $0x88] sm:$0xff] }
  0x16   : > { %554 = vmatpush3.msra.mxu0 %v277_v12  ;;  %v267_v34 = vld [vmem:[%s817_s0 + $0x8] sm:$0xff]  ;;  %v227_v35 = vld [vmem:[%s715_s22] sm:$0xf] }
  0x17   : > { %555 = vmatprep.subr.mxu0 %v292_v13  ;;  %v282_v36 = vld [vmem:[%s817_s0 + $0x80] sm:$0xff]  ;;  %v238_v38 = vsel %vm237_vm0, %v227_v35, %v9_v0 }
  0x18   : > { %556 = vmatpush3.msra.mxu0 %v276_v14  ;;  %v266_v37 = vld [vmem:[%s817_s0] sm:$0xff] }
  0x19   : > { %557 = vmatprep.subr.mxu0 %v291_v15  ;;  %v538_v41 = vld [vmem:[%s818_s1] ss:$0 sm:$0xff]  ;;  %v539_v53 = vld [vmem:[%s818_s1 + $0x1] ss:$0 sm:$0xff]  ;;  %v540_v56 = vld [vmem:[%s818_s1 + $0x2] ss:$0 sm:$0xff] }
  0x1a   : > { %558 = vmatpush3.msra.mxu0 %v275_v17 }
  0x1b   : > { %559 = vmatprep.subr.mxu0 %v290_v19 }
  0x1c   : > { %560 = vmatpush3.msra.mxu0 %v274_v20 }
  0x1d   : > { %561 = vmatprep.subr.mxu0 %v289_v21 }
  0x1e   : > { %562 = vmatpush3.msra.mxu0 %v273_v22 }
  0x1f   : > { %563 = vmatprep.subr.mxu0 %v288_v23 }
  0x20   : > { %564 = vmatpush3.msra.mxu0 %v272_v24 }
  0x21   : > { %565 = vmatprep.subr.mxu0 %v287_v25 }
  0x22   : > { %566 = vmatpush3.msra.mxu0 %v271_v26 }
  0x23   : > { %567 = vmatprep.subr.mxu0 %v286_v27 }
  0x24   : > { %568 = vmatpush3.msra.mxu0 %v270_v28 }
  0x25   : > { %569 = vmatprep.subr.mxu0 %v285_v29 }
  0x26   : > { %570 = vmatpush3.msra.mxu0 %v269_v30 }
  0x27   : > { %571 = vmatprep.subr.mxu0 %v284_v31 }
  0x28   : > { %572 = vmatpush3.msra.mxu0 %v268_v32 }
  0x29   : > { %573 = vmatprep.subr.mxu0 %v283_v33 }
  0x2a   : > { %574 = vmatpush3.msra.mxu0 %v267_v34 }
  0x2b   : > { %575 = vmatprep.subr.mxu0 %v282_v36 }
  0x2c   : > { %576 = vmatpush3.msra.mxu0 %v266_v37 }
  0x2d   : > { %368 = vmatmul.mubr.f32.vlgmr.msra.gmra.mxu0 %v238_v38 }
  0xed   : > { %v577_v39 = vpop.f32.mrf.mxu0 }
  0xef   : > { %v578_v40 = vpop.f32.mrf.mxu0 }
  0xf0   : > { %v579_v42 = vadd.f32 %v578_v40, %v577_v39 }
  0xf2   : > { %v370_v43 = vadd.f32 %v579_v42, %v538_v41 }
  0xf4   : > { %v374_v44 = vsel %vm373_vm1, %v370_v43, 0.0 }
  0xf5   : > { %375 = vadd.xlane.f32.xlu0 %v374_v44 }
 0x17e   : > { %v376_v45 = vpop.xlane.xlu0 %375 }
 0x17f   : > { %v378_v46 = vmul.f32 0.03125, %v376_v45 }
 0x181   : > { %v379_v47 = vsub.f32 %v370_v43, %v378_v46 }
 0x183   : > { %v380_v48 = vmul.f32 %v379_v47, %v379_v47 }
 0x185   : > { %v381_v49 = vsel %vm373_vm1, %v380_v48, 0.0 }
 0x186   : > { %382 = vadd.xlane.f32.xlu0 %v381_v49 }
 0x20f   : > { %v383_v50 = vpop.xlane.xlu0 %382 }
 0x210   : > { %v384_v51 = vmul.f32 0.03125, %v383_v50 }
 0x212   : > { %v385_v52 = vadd.f32 1e-05, %v384_v51 }
 0x214   : > { %605 = vrsqrt.f32 %v385_v52 }
 0x221   : > { %v606_v54 = vpop.eup %605 }
 0x222   : > { %v392_v55 = vmul.f32 %v606_v54, %v539_v53 }
 0x224   : > { %v393_v57 = vmul.f32 %v392_v55, %v379_v47 }
 0x226   : > { %v399_v58 = vadd.f32 %v540_v56, %v393_v57 }
 0x228   : > { %v401_v59 = vmul.f32 0.70710677, %v399_v58  ;;  %v400_v61 = vmul.f32 0.5, %v399_v58 }
 0x22a   : > { %607 = verf.f32 %v401_v59 }
 0x237   : > { %v608_v60 = vpop.eup %607 }
 0x238   : > { %v403_v62 = vadd.f32 1.0, %v608_v60 }
 0x23a   : > { %v404_v63 = vmul.f32 %v403_v62, %v400_v61 }
 0x23c   : > { %405 = vxpose.xlu1.b32.start.end [1/1] (short) (narrow) %v404_v63, 32 }
 0x2b8   : > { %v421_v1 = vpop.trf.xlu1 }
 0x2b9   : > { %438 = vst.msk [vmem:[%s221_s11] sm:$0xff] %vm437_vm2, %v421_v1 }
 0x2bc   : > { %v422_v2 = vpop.trf.xlu1 }
 0x2bd   : > { %439 = vst.msk [vmem:[%s221_s11 + $0x8] sm:$0xff] %vm437_vm2, %v422_v2 }
 0x2c0   : > { %v423_v3 = vpop.trf.xlu1 }
 0x2c1   : > { %440 = vst.msk [vmem:[%s221_s11 + $0x10] sm:$0xff] %vm437_vm2, %v423_v3 }
 0x2c4   : > { %v424_v4 = vpop.trf.xlu1 }
 0x2c5   : > { %441 = vst.msk [vmem:[%s221_s11 + $0x18] sm:$0xff] %vm437_vm2, %v424_v4 }
 0x2c6 PF: > { %s15_s19 = sadd.s32 1, %s631_s19   ;;  %s822_s17 = smov %s627_s18 }
 0x2c7   : > { %p12_p5 = scmp.ge.s32.totalorder %s15_s19, 4   ;;  %s823_s18 = smov %s825_s20 }
 0x2c9   :  { %14 = sbr.rel (!%p12_p5) target bundleno = 2 (0x2), region = 64 }

</bundles_post_ra>
